<compile_context>
chip_gen: v5e
topology: v5e:2x2
jax: 0.10.0
libtpu: 0.0.40
codegen_flags: <defaults>
</compile_context>

<pallas_src>
import functools

import jax
import jax.numpy as jnp
from jax.experimental import pallas as pl
from jax.experimental.pallas import tpu as pltpu

KSIZE = 3  # kernel_size=3, padding=1 -> 'same' length output


def _pick_batch_tile(batch, length):
    """How many batch elements to stack along the lane axis per grid step.

    Prefer a lane-dense tile (multiple of 128 lanes, 512..2048 lanes wide) that
    divides the batch; otherwise fall back to the whole batch in one step
    (block shape == full array shape, which is always a legal BlockSpec).
    """
    for bt in range(1, batch):
        lanes = bt * length
        if batch % bt == 0 and lanes % 128 == 0 and 512 <= lanes <= 2048:
            return bt
    return batch


def conv_block_kernel(x_ref, w1_ref, b1_ref, w2_ref, b2_ref, o_ref, *, seq_len):
    """One lane-tile (BT whole batch elements x full length) per grid step.

    x_ref  : (C_in,  BT*L)   compute-dtype input slab (batch stacked on lanes)
    w1_ref : (C_out, 3*C_in) first conv weights, tap-major flattened
    b1_ref : (C_out, 1)      f32
    w2_ref : (C_out, 3*C_out)
    b2_ref : (C_out, 1)      f32
    o_ref  : (C_out, BT*L)
    """

    def tap_stack(a):
        # Build [a_{j-1}; a_j; a_{j+1}] along sublanes, zeroing the columns that
        # fall outside each length-`seq_len` segment (conv padding=1).  The
        # shifted copies live entirely in vregs (XLU lane shifts + VPU select);
        # no scratch buffer and no misaligned ref reads.
        rows, cols = a.shape
        pos = jax.lax.broadcasted_iota(jnp.int32, (rows, cols), 1) % seq_len
        zcol = jnp.zeros((rows, 1), a.dtype)
        prev_ = jnp.concatenate([zcol, a[:, : cols - 1]], axis=-1)  # col j -> a[j-1]
        next_ = jnp.concatenate([a[:, 1:], zcol], axis=-1)          # col j -> a[j+1]
        prev_ = jnp.where(pos == 0, 0, prev_).astype(a.dtype)
        next_ = jnp.where(pos == seq_len - 1, 0, next_).astype(a.dtype)
        return jnp.concatenate([prev_, a, next_], axis=0)           # (3*rows, cols)

    cdt = x_ref.dtype

    # ---- Conv1d #1 + ReLU : one MXU matmul (K = 3*C_in) ----
    xs = tap_stack(x_ref[...])                                       # (3*C_in, NT)
    h = jnp.dot(w1_ref[...], xs, preferred_element_type=jnp.float32)
    h = jnp.maximum(h + b1_ref[...], 0.0)                            # f32 (C_out, NT)

    # ---- Conv1d #2 + ReLU : one MXU matmul (K = 3*C_out), h stays in vregs ----
    hs = tap_stack(h.astype(cdt))                                    # (3*C_out, NT)
    y = jnp.dot(w2_ref[...], hs, preferred_element_type=jnp.float32)
    y = jnp.maximum(y + b2_ref[...], 0.0)
    o_ref[...] = y.astype(o_ref.dtype)


def conv_block(x, w1, b1, w2, b2, *, compute_dtype=jnp.bfloat16, batch_tile=None):
    """x: (B, C_in, L); w1: (C_out, C_in, 3); b1: (C_out,); w2: (C_out, C_out, 3)."""
    B, c_in, L = x.shape
    c_out = w1.shape[0]
    assert w1.shape == (c_out, c_in, KSIZE) and w2.shape == (c_out, c_out, KSIZE)

    bt = batch_tile if batch_tile is not None else _pick_batch_tile(B, L)
    assert B % bt == 0
    nt = bt * L            # lanes per grid step
    n_total = B * L

    # Lane-dense slab: (C_in, B*L); lane index = b*L + l.  Cast once to the MXU
    # input dtype (bf16 halves HBM/VMEM traffic for x).
    x2 = jnp.transpose(x, (1, 0, 2)).reshape(c_in, n_total).astype(compute_dtype)

    # Tap-major flattened weights: column order (k, c) matches tap_stack's row
    # order [a_{j-1} block; a_j block; a_{j+1} block].
    w1_f = jnp.transpose(w1, (0, 2, 1)).reshape(c_out, KSIZE * c_in).astype(compute_dtype)
    w2_f = jnp.transpose(w2, (0, 2, 1)).reshape(c_out, KSIZE * c_out).astype(compute_dtype)
    b1_c = b1.reshape(c_out, 1).astype(jnp.float32)
    b2_c = b2.reshape(c_out, 1).astype(jnp.float32)

    kernel = functools.partial(conv_block_kernel, seq_len=L)

    out2 = pl.pallas_call(
        kernel,
        out_shape=jax.ShapeDtypeStruct((c_out, n_total), x.dtype),
        grid_spec=pltpu.PrefetchScalarGridSpec(
            num_scalar_prefetch=0,
            grid=(B // bt,),
            in_specs=[
                pl.BlockSpec((c_in, nt), lambda t: (0, t)),
                pl.BlockSpec((c_out, KSIZE * c_in), lambda t: (0, 0)),
                pl.BlockSpec((c_out, 1), lambda t: (0, 0)),
                pl.BlockSpec((c_out, KSIZE * c_out), lambda t: (0, 0)),
                pl.BlockSpec((c_out, 1), lambda t: (0, 0)),
            ],
            out_specs=pl.BlockSpec((c_out, nt), lambda t: (0, t)),
        ),
        compiler_params=pltpu.CompilerParams(
            dimension_semantics=("parallel",),
        ),
    )(x2, w1_f, b1_c, w2_f, b2_c)

    # Back to PyTorch NCL layout.
    return jnp.transpose(out2.reshape(c_out, B, L), (1, 0, 2))


def reference_conv_block(x, w1, b1, w2, b2):
    """Pure-JAX reference using lax conv (NCL layout, same as PyTorch Conv1d)."""
    dn = jax.lax.conv_dimension_numbers(x.shape, w1.shape, ("NCH", "OIH", "NCH"))
    h = jax.lax.conv_general_dilated(x, w1, (1,), [(1, 1)], dimension_numbers=dn)
    h = jnp.maximum(h + b1[None, :, None], 0.0)
    o = jax.lax.conv_general_dilated(h, w2, (1,), [(1, 1)], dimension_numbers=dn)
    return jnp.maximum(o + b2[None, :, None], 0.0)


if __name__ == "__main__":
    B, C_IN, C_OUT, L = 2, 4, 8, 16

    kx, k1, k2, k3, k4 = jax.random.split(jax.random.PRNGKey(0), 5)
    x = jax.random.normal(kx, (B, C_IN, L), dtype=jnp.float32)
    w1 = jax.random.normal(k1, (C_OUT, C_IN, KSIZE), dtype=jnp.float32) * 0.1
    b1 = jax.random.normal(k2, (C_OUT,), dtype=jnp.float32) * 0.1
    w2 = jax.random.normal(k3, (C_OUT, C_OUT, KSIZE), dtype=jnp.float32) * 0.1
    b2 = jax.random.normal(k4, (C_OUT,), dtype=jnp.float32) * 0.1

    ref = reference_conv_block(x, w1, b1, w2, b2)

    # Exact-parity path (f32 MXU inputs): tight check of tap ordering / layout.
    out_f32 = jax.block_until_ready(
        conv_block(x, w1, b1, w2, b2, compute_dtype=jnp.float32))
    assert out_f32.shape == (B, C_OUT, L)
    assert jnp.allclose(out_f32, ref, atol=1e-4, rtol=1e-4), "f32 path mismatch"

    # Default optimized path (bf16 MXU inputs, f32 accumulation) -- looser
    # tolerance accounts for bf16 rounding of inputs/weights.
    out = jax.block_until_ready(conv_block(x, w1, b1, w2, b2))
    assert out.shape == (B, C_OUT, L)
    assert jnp.allclose(out, ref, atol=5e-2, rtol=5e-2), "bf16 path mismatch"

    print("KERNEL_OK")
</pallas_src>

<mosaic_0001>
module attributes {stable_mosaic.version = 11 : i64} {
  func.func @conv_block_kernel(%arg0: i32, %arg1: memref<4x32xf32, #tpu.memory_space<vmem>>, %arg2: memref<8x12xf32, #tpu.memory_space<vmem>>, %arg3: memref<8x1xf32, #tpu.memory_space<vmem>>, %arg4: memref<8x24xf32, #tpu.memory_space<vmem>>, %arg5: memref<8x1xf32, #tpu.memory_space<vmem>>, %arg6: memref<8x32xf32, #tpu.memory_space<vmem>>) attributes {dimension_semantics = [#tpu.dimension_semantics<parallel>], iteration_bounds = array<i64: 1>, scalar_prefetch = 0 : i64, scratch_operands = 0 : i64, tpu.core_type = #tpu.core_type<tc>, window_params = [{transform_indices = @transform_0, window_bounds = array<i64: 4, 32>}, {pipeline_mode = #tpu.pipeline_mode<synchronous>, transform_indices = @transform_1, window_bounds = array<i64: 8, 12>}, {pipeline_mode = #tpu.pipeline_mode<synchronous>, transform_indices = @transform_2, window_bounds = array<i64: 8, 1>}, {pipeline_mode = #tpu.pipeline_mode<synchronous>, transform_indices = @transform_3, window_bounds = array<i64: 8, 24>}, {pipeline_mode = #tpu.pipeline_mode<synchronous>, transform_indices = @transform_4, window_bounds = array<i64: 8, 1>}, {transform_indices = @transform_5, window_bounds = array<i64: 8, 32>}]} {
    %c0 = arith.constant 0 : index
    %c0_0 = arith.constant 0 : index
    %0 = vector.load %arg1[%c0, %c0_0] : memref<4x32xf32, #tpu.memory_space<vmem>>, vector<4x32xf32>
    %1 = tpu.iota {dimensions = array<i32: 1>} : vector<4x32xi32>
    %c16_i32 = arith.constant 16 : i32
    %c0_i32 = arith.constant 0 : i32
    %2 = arith.cmpi eq, %c16_i32, %c0_i32 : i32
    %c1_i32 = arith.constant 1 : i32
    %3 = arith.select %2, %c1_i32, %c16_i32 : i32
    %4 = vector.broadcast %3 : i32 to vector<4x32xi32>
    %5 = arith.remsi %1, %4 : vector<4x32xi32>
    %c0_i32_1 = arith.constant 0 : i32
    %6 = vector.broadcast %c0_i32_1 : i32 to vector<4x32xi32>
    %7 = arith.cmpi ne, %5, %6 : vector<4x32xi32>
    %c0_i32_2 = arith.constant 0 : i32
    %8 = vector.broadcast %c0_i32_2 : i32 to vector<4x32xi32>
    %9 = arith.cmpi slt, %5, %8 : vector<4x32xi32>
    %c0_i32_3 = arith.constant 0 : i32
    %10 = arith.cmpi slt, %3, %c0_i32_3 : i32
    %11 = vector.broadcast %10 : i1 to vector<4x32xi1>
    %12 = vector.broadcast %11 : vector<4x32xi1> to vector<4x32xi1>
    %13 = arith.xori %9, %12 : vector<4x32xi1>
    %14 = arith.andi %13, %7 : vector<4x32xi1>
    %15 = vector.broadcast %3 : i32 to vector<4x32xi32>
    %16 = arith.addi %5, %15 : vector<4x32xi32>
    %17 = arith.select %14, %16, %5 : vector<4x32xi1>, vector<4x32xi32>
    %cst = arith.constant 0.000000e+00 : f32
    %18 = vector.broadcast %cst : f32 to vector<4x1xf32>
    %19 = vector.extract_strided_slice %0 {offsets = [0, 0], sizes = [4, 31], strides = [1, 1]} : vector<4x32xf32> to vector<4x31xf32>
    %20 = tpu.concatenate %18, %19 in 1 : vector<4x1xf32>, vector<4x31xf32> -> vector<4x32xf32>
    %21 = vector.extract_strided_slice %0 {offsets = [0, 1], sizes = [4, 31], strides = [1, 1]} : vector<4x32xf32> to vector<4x31xf32>
    %22 = tpu.concatenate %21, %18 in 1 : vector<4x31xf32>, vector<4x1xf32> -> vector<4x32xf32>
    %c0_i32_4 = arith.constant 0 : i32
    %23 = vector.broadcast %c0_i32_4 : i32 to vector<4x32xi32>
    %24 = arith.cmpi eq, %17, %23 : vector<4x32xi32>
    %c0_i32_5 = arith.constant 0 : i32
    %25 = arith.sitofp %c0_i32_5 : i32 to f32
    %26 = vector.broadcast %25 : f32 to vector<4x32xf32>
    %27 = arith.select %24, %26, %20 : vector<4x32xi1>, vector<4x32xf32>
    %c15_i32 = arith.constant 15 : i32
    %28 = vector.broadcast %c15_i32 : i32 to vector<4x32xi32>
    %29 = arith.cmpi eq, %17, %28 : vector<4x32xi32>
    %c0_i32_6 = arith.constant 0 : i32
    %30 = arith.sitofp %c0_i32_6 : i32 to f32
    %31 = vector.broadcast %30 : f32 to vector<4x32xf32>
    %32 = arith.select %29, %31, %22 : vector<4x32xi1>, vector<4x32xf32>
    %33 = tpu.concatenate %27, %0, %32 in 0 : vector<4x32xf32>, vector<4x32xf32>, vector<4x32xf32> -> vector<12x32xf32>
    %c0_7 = arith.constant 0 : index
    %c0_8 = arith.constant 0 : index
    %34 = vector.load %arg2[%c0_7, %c0_8] : memref<8x12xf32, #tpu.memory_space<vmem>>, vector<8x12xf32>
    %cst_9 = arith.constant dense<0.000000e+00> : vector<8x32xf32>
    %35 = tpu.matmul %34, %33, %cst_9 {dimension_numbers = #tpu.dot_dimension_numbers<[1], [0], [0], [1], [0, 0, 1, 1], [], []>} : vector<8x12xf32>, vector<12x32xf32>, vector<8x32xf32> -> vector<8x32xf32>
    %c0_10 = arith.constant 0 : index
    %c0_11 = arith.constant 0 : index
    %36 = vector.load %arg3[%c0_10, %c0_11] : memref<8x1xf32, #tpu.memory_space<vmem>>, vector<8x1xf32>
    %37 = vector.broadcast %36 : vector<8x1xf32> to vector<8x32xf32>
    %38 = arith.addf %35, %37 : vector<8x32xf32>
    %cst_12 = arith.constant 0.000000e+00 : f32
    %39 = vector.broadcast %cst_12 : f32 to vector<8x32xf32>
    %40 = arith.maximumf %38, %39 : vector<8x32xf32>
    %41 = tpu.iota {dimensions = array<i32: 1>} : vector<8x32xi32>
    %c16_i32_13 = arith.constant 16 : i32
    %c0_i32_14 = arith.constant 0 : i32
    %42 = arith.cmpi eq, %c16_i32_13, %c0_i32_14 : i32
    %c1_i32_15 = arith.constant 1 : i32
    %43 = arith.select %42, %c1_i32_15, %c16_i32_13 : i32
    %44 = vector.broadcast %43 : i32 to vector<8x32xi32>
    %45 = arith.remsi %41, %44 : vector<8x32xi32>
    %c0_i32_16 = arith.constant 0 : i32
    %46 = vector.broadcast %c0_i32_16 : i32 to vector<8x32xi32>
    %47 = arith.cmpi ne, %45, %46 : vector<8x32xi32>
    %c0_i32_17 = arith.constant 0 : i32
    %48 = vector.broadcast %c0_i32_17 : i32 to vector<8x32xi32>
    %49 = arith.cmpi slt, %45, %48 : vector<8x32xi32>
    %c0_i32_18 = arith.constant 0 : i32
    %50 = arith.cmpi slt, %43, %c0_i32_18 : i32
    %51 = vector.broadcast %50 : i1 to vector<8x32xi1>
    %52 = vector.broadcast %51 : vector<8x32xi1> to vector<8x32xi1>
    %53 = arith.xori %49, %52 : vector<8x32xi1>
    %54 = arith.andi %53, %47 : vector<8x32xi1>
    %55 = vector.broadcast %43 : i32 to vector<8x32xi32>
    %56 = arith.addi %45, %55 : vector<8x32xi32>
    %57 = arith.select %54, %56, %45 : vector<8x32xi1>, vector<8x32xi32>
    %cst_19 = arith.constant 0.000000e+00 : f32
    %58 = vector.broadcast %cst_19 : f32 to vector<8x1xf32>
    %59 = vector.extract_strided_slice %40 {offsets = [0, 0], sizes = [8, 31], strides = [1, 1]} : vector<8x32xf32> to vector<8x31xf32>
    %60 = tpu.concatenate %58, %59 in 1 : vector<8x1xf32>, vector<8x31xf32> -> vector<8x32xf32>
    %61 = vector.extract_strided_slice %40 {offsets = [0, 1], sizes = [8, 31], strides = [1, 1]} : vector<8x32xf32> to vector<8x31xf32>
    %62 = tpu.concatenate %61, %58 in 1 : vector<8x31xf32>, vector<8x1xf32> -> vector<8x32xf32>
    %c0_i32_20 = arith.constant 0 : i32
    %63 = vector.broadcast %c0_i32_20 : i32 to vector<8x32xi32>
    %64 = arith.cmpi eq, %57, %63 : vector<8x32xi32>
    %c0_i32_21 = arith.constant 0 : i32
    %65 = arith.sitofp %c0_i32_21 : i32 to f32
    %66 = vector.broadcast %65 : f32 to vector<8x32xf32>
    %67 = arith.select %64, %66, %60 : vector<8x32xi1>, vector<8x32xf32>
    %c15_i32_22 = arith.constant 15 : i32
    %68 = vector.broadcast %c15_i32_22 : i32 to vector<8x32xi32>
    %69 = arith.cmpi eq, %57, %68 : vector<8x32xi32>
    %c0_i32_23 = arith.constant 0 : i32
    %70 = arith.sitofp %c0_i32_23 : i32 to f32
    %71 = vector.broadcast %70 : f32 to vector<8x32xf32>
    %72 = arith.select %69, %71, %62 : vector<8x32xi1>, vector<8x32xf32>
    %73 = tpu.concatenate %67, %40, %72 in 0 : vector<8x32xf32>, vector<8x32xf32>, vector<8x32xf32> -> vector<24x32xf32>
    %c0_24 = arith.constant 0 : index
    %c0_25 = arith.constant 0 : index
    %74 = vector.load %arg4[%c0_24, %c0_25] : memref<8x24xf32, #tpu.memory_space<vmem>>, vector<8x24xf32>
    %cst_26 = arith.constant dense<0.000000e+00> : vector<8x32xf32>
    %75 = tpu.matmul %74, %73, %cst_26 {dimension_numbers = #tpu.dot_dimension_numbers<[1], [0], [0], [1], [0, 0, 1, 1], [], []>} : vector<8x24xf32>, vector<24x32xf32>, vector<8x32xf32> -> vector<8x32xf32>
    %c0_27 = arith.constant 0 : index
    %c0_28 = arith.constant 0 : index
    %76 = vector.load %arg5[%c0_27, %c0_28] : memref<8x1xf32, #tpu.memory_space<vmem>>, vector<8x1xf32>
    %77 = vector.broadcast %76 : vector<8x1xf32> to vector<8x32xf32>
    %78 = arith.addf %75, %77 : vector<8x32xf32>
    %cst_29 = arith.constant 0.000000e+00 : f32
    %79 = vector.broadcast %cst_29 : f32 to vector<8x32xf32>
    %80 = arith.maximumf %78, %79 : vector<8x32xf32>
    %c0_30 = arith.constant 0 : index
    %c0_31 = arith.constant 0 : index
    %81 = vector.load %arg6[%c0_30, %c0_31] : memref<8x32xf32, #tpu.memory_space<vmem>>, vector<8x32xf32>
    tpu.vector_store %arg6[%c0_30, %c0_31], %80 {strides = array<i32>} : memref<8x32xf32, #tpu.memory_space<vmem>>, vector<8x32xf32>,
    return
  }
  func.func @transform_0(%arg0: i32) -> (i32, i32) {
    %c0_i32 = arith.constant 0 : i32
    %c0_i32_0 = arith.constant 0 : i32
    return %c0_i32, %arg0 : i32, i32
  }
  func.func @transform_1(%arg0: i32) -> (i32, i32) {
    %c0_i32 = arith.constant 0 : i32
    %c0_i32_0 = arith.constant 0 : i32
    %c0_i32_1 = arith.constant 0 : i32
    return %c0_i32, %c0_i32_0 : i32, i32
  }
  func.func @transform_2(%arg0: i32) -> (i32, i32) {
    %c0_i32 = arith.constant 0 : i32
    %c0_i32_0 = arith.constant 0 : i32
    %c0_i32_1 = arith.constant 0 : i32
    return %c0_i32, %c0_i32_0 : i32, i32
  }
  func.func @transform_3(%arg0: i32) -> (i32, i32) {
    %c0_i32 = arith.constant 0 : i32
    %c0_i32_0 = arith.constant 0 : i32
    %c0_i32_1 = arith.constant 0 : i32
    return %c0_i32, %c0_i32_0 : i32, i32
  }
  func.func @transform_4(%arg0: i32) -> (i32, i32) {
    %c0_i32 = arith.constant 0 : i32
    %c0_i32_0 = arith.constant 0 : i32
    %c0_i32_1 = arith.constant 0 : i32
    return %c0_i32, %c0_i32_0 : i32, i32
  }
  func.func @transform_5(%arg0: i32) -> (i32, i32) {
    %c0_i32 = arith.constant 0 : i32
    %c0_i32_0 = arith.constant 0 : i32
    return %c0_i32, %arg0 : i32, i32
  }
}

</mosaic_0001>

<bundles_post_ra>
// kernel: tpu_custom_call.1
= control target key start
LH: loop header
LB: loop body
LE: loop exit
PB: predicated region body
PF: predicated region fallthrough
CT: control target
= control target key end

     0   :  { %10 = vsyncpa [#allocation3], 0  ;;  %s310_s0 = inlined_call_operand.hbm [shape: f32[4,32], index: 0, kind: input, shape index: {}]   ;;  %s311_s1 = inlined_call_operand.vmem [shape: f32[8,12], index: 1, kind: input, shape index: {}]   ;;  %s312_s2 = inlined_call_operand.vmem [shape: f32[8,1], index: 2, kind: input, shape index: {}]   ;;  %s313_s3 = inlined_call_operand.vmem [shape: f32[8,24], index: 3, kind: input, shape index: {}]   ;;  %s314_s4 = inlined_call_operand.vmem [shape: f32[8,1], index: 4, kind: input, shape index: {}]   ;;  %s315_s5 = inlined_call_operand.hbm [shape: f32[8,32], index: 5, kind: output, shape index: {}]  }
   0x1   :  { %11 = vsyncpa [#allocation4], 0  ;;  %s17_s20 = sshll.u32 %s310_s0, 4  ;;  %s233_s21 = smov [#allocation2]   ;;  %s18_s20 = int_to_ptr.hbm [resolvable:$true] %s17_s20 }
   0x2   :  { %s19_s22 = sshll.u32 %s233_s21, 4  ;;  %s20_s22 = int_to_ptr.vmem [resolvable:$true] %s19_s22 }
   0x3   :  { %22 = dma.hbm_to_vmem [thread:$0]  %s18_s20, 64, %s20_s22, [#allocation3]  }
   0x4   :  { %229 = dma.done.wait [#allocation3], 64  }
   0x5   :  { %230 = vsyncadd [#allocation3], 4294967232  ;;  %v35_v0 = vld [vmem:[#allocation2] sm:$0xf]  ;;  %s234_s23 = smov 127   ;;  %s235_s24 = smov 1   ;;  %v36_v3 = vlaneseq }
   0x6   :  { %56 = vrot.lane.b32.xlu0 %v35_v0, %s234_s23  ;;  %v70_v1 = vld [vmem:[%s312_s2] sm:$0xff]  ;;  %v236_v2 = vmov 0   ;;  %vm59_vm0 = vcmask 252928   ;;  %vm67_vm2 = vcmask 1043456   ;;  %vm54_vm3 = vcmask 7168   ;;  %s156_s8 = sshll.u32 %s315_s5, 4  ;;  %s157_s8 = int_to_ptr.hbm [resolvable:$true] %s156_s8 }
   0x7   :  { %178 = vset.pattern.permute.xlu1 %v236_v2  ;;  %179 = vset.pattern.permute.xlu2 %v236_v2  ;;  %v37_v4 = vand.u32 127, %v36_v3  ;;  %v65_v10 = vrot.slane %v35_v0, 4  ;;  %v69_v15 = vld [vmem:[%s311_s1] sm:$0xff]  ;;  %vm76_vm5 = vcmask 97280   ;;  %vm122_vm8 = vcmask 195584  }
   0x8   :  { %73 = vperm.xlu1 %178, %v70_v1   ;;  %180 = vset.pattern.permute.xlu0 %v236_v2  ;;  %v116_v21 = vld [vmem:[%s314_s4] sm:$0xff]  ;;  %s237_s4 = smov [#allocation5]   ;;  %vm147_vm9 = vcmask 261120  }
   0x9   :  { %v42_v5 = vand.u32 15, %v37_v4  ;;  %v115_v25 = vld [vmem:[%s313_s3] sm:$0xff]  ;;  %s154_s30 = sshll.u32 %s237_s4, 4  ;;  %s155_s30 = int_to_ptr.vmem [resolvable:$true] %s154_s30 }
   0xb   :  { %vm276_vm1 = vcmp.eq.s32.totalorder %v42_v5, 15  ;;  %vm283_vm4 = vcmp.eq.s32.totalorder %v42_v5, 0 }
   0xc   :  { %vm168_vm6 = vmneg %vm276_vm1 }
   0xd   :  { %vm170_vm7 = vmneg %vm283_vm4 }
   0xe   :  { %51 = vrot.lane.b32.xlu0 %v35_v0, %s235_s24 }
  0x78   :  { %v57_v7 = vpop.permute.xlu0 %56 }
  0x79   :  { %v60_v8 = vsel %vm59_vm0, %v57_v7, 0.0 }
  0x7a   :  { %v64_v9 = vsel %vm276_vm1, 0.0, %v60_v8  ;;  %v74_v17 = vpop.permute.xlu1 %73 }
  0x7b   :  { %166 = vmatpush.msk.msra.mxu0 %vm67_vm2, %v64_v9 }
  0x80   :  { %v52_v12 = vpop.permute.xlu0 %51 }
  0x81   :  { %v55_v13 = vsel %vm54_vm3, 0.0, %v52_v12 }
  0x82   :  { %v62_v14 = vsel %vm283_vm4, 0.0, %v55_v13 }
  0x83   :  { %v68_v16 = vsel %vm67_vm2, %v62_v14, %v65_v10 }
  0x84   :  { %98 = vmatpush.msra.mxu0 %v68_v16 }
  0x85   :  { %167 = vmatmul.msk.f32.vlgmr.msra.gmra.mxu0 %vm76_vm5, %v69_v15 }
 0x102   :  { %v100_v18 = vpop.f32.mrf.mxu0 }
 0x103   :  { %v101_v19 = vadd.f32 %v100_v18, %v74_v17 }
 0x105   :  { %v103_v20 = vmax.f32 %v101_v19, 0.0 }
 0x107   :  { %105 = vrot.lane.b32.xlu2 %v103_v20, %s235_s24  ;;  %109 = vrot.lane.b32.xlu1 %v103_v20, %s234_s23 }
 0x10f   :  { %119 = vperm.xlu2 %179, %v116_v21  }
 0x161   :  { %v106_v24 = vpop.permute.xlu2 %105 }
 0x162   :  { %v108_v26 = vsel %vm54_vm3, 0.0, %v106_v24 }
 0x169   :  { %v120_v27 = vpop.permute.xlu2 %119 }
 0x179   :  { %v110_v22 = vpop.permute.xlu1 %109 }
 0x17a   :  { %v112_v23 = vsel %vm59_vm0, %v110_v22, 0.0 }
 0x17b   :  { %169 = vmatpush.msk.msra.mxu1 %vm168_vm6, %v112_v23 }
 0x17d   :  { %140 = vmatpush.msra.mxu1 %v103_v20 }
 0x17f   :  { %171 = vmatpush.msk.msra.mxu1 %vm170_vm7, %v108_v26 }
 0x180   :  { %172 = vmatmul.msk.f32.vlgmr.msra.gmra.mxu1 %vm122_vm8, %v115_v25 }
 0x1fd   :  { %v143_v28 = vpop.f32.mrf.mxu1 }
 0x1fe   :  { %v144_v29 = vadd.f32 %v143_v28, %v120_v27 }
 0x200   :  { %v146_v30 = vmax.f32 %v144_v29, 0.0 }
 0x202   :  { %148 = vst.msk [vmem:[#allocation5] sm:$0xff] %vm147_vm9, %v146_v30 }
 0x203   :  { %159 = dma.vmem_to_hbm [thread:$0]  %s155_s30, 128, %s157_s8, [#allocation4]  }
 0x204   :  { %231 = dma.done.wait [#allocation4], 128  }
 0x205   :  { %232 = vsyncadd [#allocation4], 4294967168 }
 0x206   :  { %164 = vsyncpa [#allocation3], 1 }
 0x207   :  { %165 = vsyncpa [#allocation4], 1 }

</bundles_post_ra>
